<compile_context>
chip_gen: v6e
topology: v6e:2x2x1
jax: 0.10.0
libtpu: 0.0.40
codegen_flags: <defaults>
</compile_context>

<pallas_src>
import functools

import jax
import jax.numpy as jnp
from jax.experimental import pallas as pl
from jax.experimental.pallas import tpu as pltpu


def _ce_kernel(tgt_ref, logits_ref, loss_ref, m_scr, l_scr, picked_scr,
               *, ignore_index):
    # logits_ref: (tm, tv) block; tgt_ref/loss_ref: (tm, 1); scratch: (tm, 1) f32.
    k = pl.program_id(1)
    nk = pl.num_programs(1)
    tv = logits_ref.shape[-1]

    @pl.when(k == 0)
    def _init():
        m_scr[...] = jnp.full(m_scr.shape, -jnp.inf, dtype=m_scr.dtype)
        l_scr[...] = jnp.zeros(l_scr.shape, dtype=l_scr.dtype)
        picked_scr[...] = jnp.zeros(picked_scr.shape, dtype=picked_scr.dtype)

    tgt = tgt_ref[...]                              # (tm, 1) int32
    xf = logits_ref[...].astype(jnp.float32)        # widened once, shared below

    # Online logsumexp update (all accumulation in f32).
    chunk_max = jnp.max(xf, axis=-1, keepdims=True)
    m_prev = m_scr[...]
    m_new = jnp.maximum(m_prev, chunk_max)

    p = jnp.exp(xf - m_new)                         # (tm, tv) f32, EUP
    alpha = jnp.exp(m_prev - m_new)                 # (tm, 1) f32
    l_scr[...] = l_scr[...] * alpha + jnp.sum(p, axis=-1, keepdims=True)
    m_scr[...] = m_new

    # Target logit: (1, tv) iota offset by the chunk start, broadcast-compared
    # against the (tm, 1) target column (no full (tm, tv) iota materialized).
    ids = jax.lax.broadcasted_iota(jnp.int32, (1, tv), 1) + k * tv
    picked_scr[...] += jnp.sum(jnp.where(ids == tgt, xf, 0.0),
                               axis=-1, keepdims=True)

    @pl.when(k == nk - 1)
    def _finalize():
        lse = m_scr[...] + jnp.log(l_scr[...])
        loss = lse - picked_scr[...]
        # nll_loss(reduction='none') emits 0 for ignore_index targets.
        loss = jnp.where(tgt == ignore_index, 0.0, loss)
        loss_ref[...] = loss.astype(loss_ref.dtype)


def _pick_divisor_tile(extent, desired, align):
    """Largest multiple of `align` that divides `extent` and is <= desired."""
    t = min(desired, extent)
    t -= t % align
    while t >= align:
        if extent % t == 0:
            return t
        t -= align
    return None


def vocab_sequence_parallel_cross_entropy_loss(
    logits, target, *, reduction="mean", ignore_index=-100,
    label_smoothing=0.0, tm=256, tv=2048,
):
    """Forward of VocabSequenceParallelCrossEntropyLoss (sp_size == 1).

    logits: (N, V) float array (N = bsz * seq_local), f32 or bf16.
    target: (N,) integer array.
    Returns scalar (reduction='mean') or (N,) per-token losses ('none').
    """
    if reduction not in ("mean", "none"):
        raise NotImplementedError("Only support reduction = 'mean' or 'none'")
    # TODO(synk): label_smoothing is accepted but unused, matching the reference
    #             PyTorch forward (which never applies it).

    N, V = logits.shape
    out_dtype = logits.dtype
    tgt = target.astype(jnp.int32)

    # Token tile: as large as possible, sublane aligned; pad tokens if N has no
    # aligned divisor (padded rows use ignore_index -> zero loss).
    tm_eff = _pick_divisor_tile(N, tm, 8)
    if tm_eff is None:
        tm_eff = max(8, min(tm - tm % 8, (N + 7) // 8 * 8))
    n_pad = pl.cdiv(N, tm_eff) * tm_eff
    if n_pad != N:
        logits = jnp.pad(logits, ((0, n_pad - N), (0, 0)))
        tgt = jnp.pad(tgt, (0, n_pad - N), constant_values=ignore_index)

    # Vocab: pad (rarely needed) to a lane multiple with the dtype min so the
    # padded columns never win the max and vanish under exp; then pick a
    # lane-aligned divisor tile.
    if V % 128 != 0:
        v_pad = pl.cdiv(V, 128) * 128
        neg = jnp.asarray(jnp.finfo(logits.dtype).min, dtype=logits.dtype)
        logits = jnp.pad(logits, ((0, 0), (0, v_pad - V)), constant_values=neg)
    else:
        v_pad = V
    tv_eff = _pick_divisor_tile(v_pad, tv, 128)
    if tv_eff is None:
        tv_eff = v_pad

    tgt2d = tgt.reshape(n_pad, 1)
    grid = (n_pad // tm_eff, v_pad // tv_eff)

    per_token = pl.pallas_call(
        functools.partial(_ce_kernel, ignore_index=ignore_index),
        out_shape=jax.ShapeDtypeStruct((n_pad, 1), jnp.float32),
        grid_spec=pltpu.PrefetchScalarGridSpec(
            num_scalar_prefetch=0,
            grid=grid,
            in_specs=[
                pl.BlockSpec((tm_eff, 1), lambda i, k: (i, 0)),        # targets
                pl.BlockSpec((tm_eff, tv_eff), lambda i, k: (i, k)),   # logits
            ],
            out_specs=pl.BlockSpec((tm_eff, 1), lambda i, k: (i, 0)),
            scratch_shapes=[pltpu.VMEM((tm_eff, 1), jnp.float32)] * 3,
        ),
        compiler_params=pltpu.CompilerParams(
            dimension_semantics=("parallel", "arbitrary"),
            vmem_limit_bytes=64 * 1024 * 1024,
        ),
    )(tgt2d, logits)

    per_token = per_token.reshape(-1)[:N]
    if reduction == "mean":
        # loss_mean_func: sum(losses.float()) / numel
        return jnp.sum(per_token) / N
    # torch returns loss_all in the logits dtype for reduction='none'
    return per_token.astype(out_dtype)


def _reference(logits, target, ignore_index=-100):
    x = logits.astype(jnp.float32)
    logp = jax.nn.log_softmax(x, axis=-1)
    picked = jnp.take_along_axis(
        logp, jnp.clip(target, 0, x.shape[-1] - 1)[:, None].astype(jnp.int32),
        axis=-1)[:, 0]
    loss = -picked
    return jnp.where(target == ignore_index, 0.0, loss)


if __name__ == "__main__":
    key = jax.random.PRNGKey(0)
    bsz, seq, vocab = 2, 8, 512            # small synthetic shapes
    n_tokens = bsz * seq

    k1, k2 = jax.random.split(key)
    logits = jax.random.normal(k1, (n_tokens, vocab), dtype=jnp.float32)
    target = jax.random.randint(k2, (n_tokens,), 0, vocab, dtype=jnp.int32)
    target = target.at[3].set(-100)        # exercise the ignore_index path

    # f32, multi-chunk vocab path (tv=128 -> 4 chunks, exercises online-lse)
    loss_none = vocab_sequence_parallel_cross_entropy_loss(
        logits, target, reduction="none", tv=128)
    loss_mean = vocab_sequence_parallel_cross_entropy_loss(
        logits, target, reduction="mean", tv=128)
    jax.block_until_ready((loss_none, loss_mean))

    ref = _reference(logits, target)
    assert jnp.allclose(loss_none, ref, atol=1e-4, rtol=1e-4)
    assert jnp.allclose(loss_mean, jnp.sum(ref) / ref.size, atol=1e-4, rtol=1e-4)

    # bf16 fast path (single kernel handles both dtypes)
    logits_bf16 = logits.astype(jnp.bfloat16)
    loss_bf16 = vocab_sequence_parallel_cross_entropy_loss(
        logits_bf16, target, reduction="none", tv=128)
    jax.block_until_ready(loss_bf16)
    ref_bf16 = _reference(logits_bf16.astype(jnp.float32), target)
    assert jnp.allclose(loss_bf16.astype(jnp.float32), ref_bf16, atol=7e-2)

    # default tiling + ragged token count (exercises the token-padding path)
    k3, k4 = jax.random.split(k1)
    lr = jax.random.normal(k3, (12, vocab), dtype=jnp.float32)
    tr = jax.random.randint(k4, (12,), 0, vocab, dtype=jnp.int32)
    out_r = vocab_sequence_parallel_cross_entropy_loss(lr, tr, reduction="none")
    mean_r = vocab_sequence_parallel_cross_entropy_loss(lr, tr, reduction="mean")
    jax.block_until_ready((out_r, mean_r))
    ref_r = _reference(lr, tr)
    assert out_r.shape == (12,)
    assert jnp.allclose(out_r, ref_r, atol=1e-4, rtol=1e-4)
    assert jnp.allclose(mean_r, jnp.sum(ref_r) / 12, atol=1e-4, rtol=1e-4)

    print("KERNEL_OK")
</pallas_src>

<mosaic_0001>
module attributes {stable_mosaic.version = 11 : i64} {
  func.func @_ce_kernel(%arg0: i32, %arg1: i32, %arg2: memref<16x1xi32, #tpu.memory_space<vmem>>, %arg3: memref<16x128xf32, #tpu.memory_space<vmem>>, %arg4: memref<16x1xf32, #tpu.memory_space<vmem>>, %arg5: memref<16x1xf32, #tpu.memory_space<vmem>>, %arg6: memref<16x1xf32, #tpu.memory_space<vmem>>, %arg7: memref<16x1xf32, #tpu.memory_space<vmem>>) attributes {dimension_semantics = [#tpu.dimension_semantics<parallel>, #tpu.dimension_semantics<arbitrary>], iteration_bounds = array<i64: 1, 4>, scalar_prefetch = 0 : i64, scratch_operands = 3 : i64, tpu.core_type = #tpu.core_type<tc>, window_params = [{transform_indices = @transform_0, window_bounds = array<i64: 16, 1>}, {transform_indices = @transform_1, window_bounds = array<i64: 16, 128>}, {transform_indices = @transform_2, window_bounds = array<i64: 16, 1>}]} {
    %c0_i32 = arith.constant 0 : i32
    %0 = arith.cmpi eq, %arg1, %c0_i32 : i32
    %1 = arith.extui %0 : i1 to i32
    %c0_i32_0 = arith.constant 0 : i32
    %2 = arith.cmpi ne, %1, %c0_i32_0 : i32
    scf.if %2 {
      %cst_20 = arith.constant 0xFF800000 : f32
      %38 = vector.broadcast %cst_20 : f32 to vector<16x1xf32>
      %c0_21 = arith.constant 0 : index
      %c0_22 = arith.constant 0 : index
      %39 = vector.load %arg5[%c0_21, %c0_22] : memref<16x1xf32, #tpu.memory_space<vmem>>, vector<16x1xf32>
      tpu.vector_store %arg5[%c0_21, %c0_22], %38 {strides = array<i32>} : memref<16x1xf32, #tpu.memory_space<vmem>>, vector<16x1xf32>,
      %cst_23 = arith.constant 0.000000e+00 : f32
      %40 = vector.broadcast %cst_23 : f32 to vector<16x1xf32>
      %c0_24 = arith.constant 0 : index
      %c0_25 = arith.constant 0 : index
      %41 = vector.load %arg6[%c0_24, %c0_25] : memref<16x1xf32, #tpu.memory_space<vmem>>, vector<16x1xf32>
      tpu.vector_store %arg6[%c0_24, %c0_25], %40 {strides = array<i32>} : memref<16x1xf32, #tpu.memory_space<vmem>>, vector<16x1xf32>,
      %cst_26 = arith.constant 0.000000e+00 : f32
      %42 = vector.broadcast %cst_26 : f32 to vector<16x1xf32>
      %c0_27 = arith.constant 0 : index
      %c0_28 = arith.constant 0 : index
      %43 = vector.load %arg7[%c0_27, %c0_28] : memref<16x1xf32, #tpu.memory_space<vmem>>, vector<16x1xf32>
      tpu.vector_store %arg7[%c0_27, %c0_28], %42 {strides = array<i32>} : memref<16x1xf32, #tpu.memory_space<vmem>>, vector<16x1xf32>,
    } else {
    }
    %c0 = arith.constant 0 : index
    %c0_1 = arith.constant 0 : index
    %3 = vector.load %arg2[%c0, %c0_1] : memref<16x1xi32, #tpu.memory_space<vmem>>, vector<16x1xi32>
    %c0_2 = arith.constant 0 : index
    %c0_3 = arith.constant 0 : index
    %4 = vector.load %arg3[%c0_2, %c0_3] : memref<16x128xf32, #tpu.memory_space<vmem>>, vector<16x128xf32>
    %cst = arith.constant dense<0xFF800000> : vector<16xf32>
    %5 = vector.multi_reduction <maximumf>, %4, %cst [1] : vector<16x128xf32> to vector<16xf32>
    %6 = vector.shape_cast %5 : vector<16xf32> to vector<16x1xf32>
    %c0_4 = arith.constant 0 : index
    %c0_5 = arith.constant 0 : index
    %7 = vector.load %arg5[%c0_4, %c0_5] : memref<16x1xf32, #tpu.memory_space<vmem>>, vector<16x1xf32>
    %8 = arith.maximumf %7, %6 : vector<16x1xf32>
    %9 = vector.broadcast %8 : vector<16x1xf32> to vector<16x128xf32>
    %10 = arith.subf %4, %9 : vector<16x128xf32>
    %11 = math.exp %10 : vector<16x128xf32>
    %12 = arith.subf %7, %8 : vector<16x1xf32>
    %13 = math.exp %12 : vector<16x1xf32>
    %c0_6 = arith.constant 0 : index
    %c0_7 = arith.constant 0 : index
    %14 = vector.load %arg6[%c0_6, %c0_7] : memref<16x1xf32, #tpu.memory_space<vmem>>, vector<16x1xf32>
    %15 = arith.mulf %14, %13 : vector<16x1xf32>
    %cst_8 = arith.constant dense<0.000000e+00> : vector<16xf32>
    %16 = vector.multi_reduction <add>, %11, %cst_8 [1] : vector<16x128xf32> to vector<16xf32>
    %17 = vector.shape_cast %16 : vector<16xf32> to vector<16x1xf32>
    %18 = arith.addf %15, %17 : vector<16x1xf32>
    %c0_9 = arith.constant 0 : index
    %c0_10 = arith.constant 0 : index
    %19 = vector.load %arg6[%c0_9, %c0_10] : memref<16x1xf32, #tpu.memory_space<vmem>>, vector<16x1xf32>
    tpu.vector_store %arg6[%c0_9, %c0_10], %18 {strides = array<i32>} : memref<16x1xf32, #tpu.memory_space<vmem>>, vector<16x1xf32>,
    %c0_11 = arith.constant 0 : index
    %c0_12 = arith.constant 0 : index
    %20 = vector.load %arg5[%c0_11, %c0_12] : memref<16x1xf32, #tpu.memory_space<vmem>>, vector<16x1xf32>
    tpu.vector_store %arg5[%c0_11, %c0_12], %8 {strides = array<i32>} : memref<16x1xf32, #tpu.memory_space<vmem>>, vector<16x1xf32>,
    %21 = tpu.iota {dimensions = array<i32: 1>} : vector<1x128xi32>
    %c128_i32 = arith.constant 128 : i32
    %22 = arith.muli %arg1, %c128_i32 : i32
    %23 = vector.broadcast %22 : i32 to vector<1x128xi32>
    %24 = arith.addi %21, %23 : vector<1x128xi32>
    %c0_13 = arith.constant 0 : index
    %c0_14 = arith.constant 0 : index
    %25 = vector.load %arg7[%c0_13, %c0_14] : memref<16x1xf32, #tpu.memory_space<vmem>>, vector<16x1xf32>
    %26 = vector.broadcast %24 : vector<1x128xi32> to vector<16x128xi32>
    %27 = vector.broadcast %3 : vector<16x1xi32> to vector<16x128xi32>
    %28 = arith.cmpi eq, %26, %27 : vector<16x128xi32>
    %cst_15 = arith.constant 0.000000e+00 : f32
    %29 = vector.broadcast %cst_15 : f32 to vector<16x128xf32>
    %30 = arith.select %28, %4, %29 : vector<16x128xi1>, vector<16x128xf32>
    %cst_16 = arith.constant dense<0.000000e+00> : vector<16xf32>
    %31 = vector.multi_reduction <add>, %30, %cst_16 [1] : vector<16x128xf32> to vector<16xf32>
    %32 = vector.shape_cast %31 : vector<16xf32> to vector<16x1xf32>
    %33 = arith.addf %25, %32 : vector<16x1xf32>
    %c0_17 = arith.constant 0 : index
    %c0_18 = arith.constant 0 : index
    %34 = vector.load %arg7[%c0_17, %c0_18] : memref<16x1xf32, #tpu.memory_space<vmem>>, vector<16x1xf32>
    tpu.vector_store %arg7[%c0_17, %c0_18], %33 {strides = array<i32>} : memref<16x1xf32, #tpu.memory_space<vmem>>, vector<16x1xf32>,
    %c3_i32 = arith.constant 3 : i32
    %35 = arith.cmpi eq, %arg1, %c3_i32 : i32
    %36 = arith.extui %35 : i1 to i32
    %c0_i32_19 = arith.constant 0 : i32
    %37 = arith.cmpi ne, %36, %c0_i32_19 : i32
    scf.if %37 {
      %c0_20 = arith.constant 0 : index
      %c0_21 = arith.constant 0 : index
      %38 = vector.load %arg5[%c0_20, %c0_21] : memref<16x1xf32, #tpu.memory_space<vmem>>, vector<16x1xf32>
      %c0_22 = arith.constant 0 : index
      %c0_23 = arith.constant 0 : index
      %39 = vector.load %arg6[%c0_22, %c0_23] : memref<16x1xf32, #tpu.memory_space<vmem>>, vector<16x1xf32>
      %40 = math.log %39 : vector<16x1xf32>
      %41 = arith.addf %38, %40 : vector<16x1xf32>
      %c0_24 = arith.constant 0 : index
      %c0_25 = arith.constant 0 : index
      %42 = vector.load %arg7[%c0_24, %c0_25] : memref<16x1xf32, #tpu.memory_space<vmem>>, vector<16x1xf32>
      %43 = arith.subf %41, %42 : vector<16x1xf32>
      %c-100_i32 = arith.constant -100 : i32
      %44 = vector.broadcast %c-100_i32 : i32 to vector<16x1xi32>
      %45 = arith.cmpi eq, %3, %44 : vector<16x1xi32>
      %cst_26 = arith.constant 0.000000e+00 : f32
      %46 = vector.broadcast %cst_26 : f32 to vector<16x1xf32>
      %47 = arith.select %45, %46, %43 : vector<16x1xi1>, vector<16x1xf32>
      %c0_27 = arith.constant 0 : index
      %c0_28 = arith.constant 0 : index
      %48 = vector.load %arg4[%c0_27, %c0_28] : memref<16x1xf32, #tpu.memory_space<vmem>>, vector<16x1xf32>
      tpu.vector_store %arg4[%c0_27, %c0_28], %47 {strides = array<i32>} : memref<16x1xf32, #tpu.memory_space<vmem>>, vector<16x1xf32>,
    } else {
    }
    return
  }
  func.func @transform_0(%arg0: i32, %arg1: i32) -> (i32, i32) {
    %c0_i32 = arith.constant 0 : i32
    %c0_i32_0 = arith.constant 0 : i32
    return %arg0, %c0_i32 : i32, i32
  }
  func.func @transform_1(%arg0: i32, %arg1: i32) -> (i32, i32) {
    %c0_i32 = arith.constant 0 : i32
    return %arg0, %arg1 : i32, i32
  }
  func.func @transform_2(%arg0: i32, %arg1: i32) -> (i32, i32) {
    %c0_i32 = arith.constant 0 : i32
    %c0_i32_0 = arith.constant 0 : i32
    return %arg0, %c0_i32 : i32, i32
  }
}

</mosaic_0001>

<bundles_post_ra>
// kernel: tpu_custom_call.1
= control target key start
LH: loop header
LB: loop body
LE: loop exit
PB: predicated region body
PF: predicated region fallthrough
CT: control target
= control target key end

     0   :  { %7 = vsyncpa [#allocation6], 0  ;;  %s719_s0 = inlined_call_operand.vmem [shape: s32[16,1], index: 0, kind: input, shape index: {}]   ;;  %s720_s1 = inlined_call_operand.hbm [shape: f32[16,512], index: 1, kind: input, shape index: {}]   ;;  %s721_s2 = inlined_call_operand.vmem [shape: f32[16,1], index: 2, kind: output, shape index: {}]  }
   0x1   :  { %9 = vsyncpa [#allocation6 + $0x1], 0  ;;  %s595_s9 = smov 0   ;;  %s597_s10 = smov 0  }
   0x2   :  { %s599_s11 = smov 0   ;;  %s601_s12 = smov 0  }
   0x3   :  { %s603_s13 = smov 0   ;;  %s605_s14 = smov 0  }
   0x4 LB: > { %s403_s15 = sadd.s32 4294967295, %s571_s14   ;;  %s24_s16 = sadd.s32 1, %s567_s13  ;;  %s571_s14 = sphi %s605_s14, %s15_s14   ;;  %s567_s13 = sphi %s603_s13, %s729_s13   ;;  %s563_s12 = sphi %s601_s12, %s728_s12   ;;  %s559_s11 = sphi %s599_s11, %s727_s11   ;;  %s555_s10 = sphi %s597_s10, %s726_s10   ;;  %s551_s9 = sphi %s595_s9, %s725_s9  }
   0x5   : > { %p25_p0 = scmp.ge.s32.totalorder %s24_s16, 4  ;;  %s62_s17 = sadd.s32 1, %s559_s11 }
   0x6   : > { %p69_p1 = scmp.ne.s32.totalorder %s559_s11, %s555_s10  ;;  %p70_p2 = scmp.eq.s32.totalorder %s571_s14, 0 }
   0x7   : > { %s731_s16 = smov (%p25_p0, %s24_s16), 0  ;;  %p75_p4 = scmp.ne.s32.totalorder %s555_s10, %s551_s9 }
   0x8   : > { %p631_p3 = por %p70_p2, %p69_p1  ;;  %s58_s19 = ssub.s32 %s567_s13, %s731_s16 }
   0x9   : > { %p76_p5 = scmp.eq.s32.totalorder %s403_s15, 0  ;;  %p60_p6 = scmp.eq.s32.totalorder %s58_s19, 0 }
   0xa   : > { %p424_p8 = scmp.lt.s32.totalorder %s571_s14, 4  ;;  %s134_s22 = sand.u32 1, %s559_s11  }
   0xb   : > { %p638_p7 = por %p76_p5, %p75_p4  ;;  %s408_s23 = sshll.u32 %s567_s13, 7 }
   0xc   : > { %s644_s21 = scalar_select %p60_p6, %s559_s11, %s62_s17  }
   0xd   : > { %s407_s24 = sshll.u32 %s134_s22, 4  ;;  %s146_s27 = scalar_lea.hbm %s720_s1, %s408_s23 }
   0xe   : > { %s138_s28 = scalar_lea.vmem [#allocation5], %s407_s24  ;;  %p653_p9 = pnand %p424_p8, %p631_p3 }
   0xf   : > { %s147_s29 = sshll.u32 %s138_s28, 4  ;;  %p409_p10 = scmp.ge.s32.totalorder %s571_s14, 1  ;;  %s148_s29 = int_to_ptr.vmem [resolvable:$true] %s147_s29 }
  0x10   : > { %s135_s3 = scalar_lea.sflag [#allocation6], %s134_s22  ;;  %p495_p11 = pneg %p653_p9 }
  0x11   : > { %s506_s4 = scalar_lea.vmem %s148_s29, 256  ;;  %s573_s5 = smov [#allocation5]  }
  0x12   : > { %p507_p12 = scmp.ne.s32.totalorder %s148_s29, %s506_s4  ;;  %s511_s6 = sshll.u32 %s573_s5, 4  ;;  %s512_s6 = int_to_ptr.vmem [resolvable:$false] %s511_s6 }
  0x13   : > { %s513_s7 = scalar_lea.vmem %s512_s6, 512  ;;  %p514_p1 = scmp.lt.s32.totalorder %s148_s29, %s512_s6 }
  0x14   : > { %p509_p13 = pnand %p507_p12, %p495_p11  ;;  %p515_p2 = scmp.lt.s32.totalorder %s513_s7, %s506_s4 }
  0x16   : > { %p510_p0 = pneg %p509_p13  ;;  %p516_p3 = por %p515_p2, %p514_p1 }
  0x18   : > { %p517_p4 = pnand %p516_p3, %p510_p0 }
  0x1a   : > { %520 = shalt.err (!%p517_p4)
}
  0x1b   : > { %s574_s8 = smov 512   ;;  %s575_s9 = smov 128  }
  0x1c   : > { %s576_s15 = smov 8   ;;  %p155_p5 = scmp.lt.s32.totalorder %s571_s14, 5 }
  0x1d   : > { %423 = dma.hbm_to_vmem [thread:$0]  (!%p653_p9), %s146_s27, 256, %s148_s29, %s135_s3, %s574_s8, %s575_s9, %s576_s15  }
  0x1e   : > { %p156_p6 = pnand %p409_p10, %p155_p5 }
  0x1f   : > { %s161_s17 = sand.u32 (!%p156_p6), 1, %s555_s10  }
  0x20   : > { %159 = sbr.rel (%p156_p6) target bundleno = 506 (0x1fa), region = 28  ;;  %s410_s18 = sshll.u32 (!%p156_p6), %s161_s17, 4 }
  0x21   : > { %s162_s19 = scalar_lea.sflag (!%p156_p6), [#allocation6], %s161_s17  ;;  %s165_s22 = scalar_lea.vmem (!%p156_p6), [#allocation5], %s410_s18 }
  0x25   : > { %546 = dma.done.wait (%p638_p7), %s162_s19, 256  }
  0x26   : > { %548 = vsyncadd (%p638_p7), %s162_s19, 4294967040  ;;  %p411_p8 = scmp.ne.s32.totalorder %s563_s12, 0 }
  0x28   : > { %207 = sbr.rel (%p411_p8) target bundleno = 49 (0x31), region = 36 }
  0x2d   : > { %vm208_vm0 = vcmask 7168   ;;  %v577_v0 = vmov -inf   ;;  %v578_v1 = vmov 0.0  }
  0x2e   : > { %209 = vst.msk [vmem:[#allocation2] sm:$0xff] %vm208_vm0, %v577_v0  ;;  %210 = vst.msk [vmem:[#allocation2 + $0x8] sm:$0xff] %vm208_vm0, %v577_v0 }
  0x2f   : > { %211 = vst.msk [vmem:[#allocation3] sm:$0xff] %vm208_vm0, %v578_v1  ;;  %212 = vst.msk [vmem:[#allocation3 + $0x8] sm:$0xff] %vm208_vm0, %v578_v1 }
  0x30   : > { %213 = vst.msk [vmem:[#allocation4] sm:$0xff] %vm208_vm0, %v578_v1  ;;  %214 = vst.msk [vmem:[#allocation4 + $0x8] sm:$0xff] %vm208_vm0, %v578_v1 }
  0x31 PF: > { %v217_v2 = vld [vmem:[%s165_s22] sm:$0xff]  ;;  %v218_v3 = vld [vmem:[%s165_s22 + $0x8] sm:$0xff]  ;;  %v579_v4 = vmov 0   ;;  %vm259_vm1 = vcmask 7168   ;;  %v264_v15 = vlaneseq  ;;  %s412_s26 = sshll.u32 %s563_s12, 7  ;;  %p413_p7 = scmp.ne.s32.totalorder %s563_s12, 3 }
  0x32   : > { %219 = vmax.xlane.f32.xlu0 %v217_v2  ;;  %479 = vset.pattern.permute.xlu1 %v579_v4  ;;  %v674_v5 = vld [vmem:[%s719_s0] sm:$0xff]  ;;  %v682_v14 = vld [vmem:[%s719_s0 + $0x8] sm:$0xff]  ;;  %v267_v17 = vstv %s412_s26 }
  0x33   : > { %480 = vset.pattern.permute.xlu0 %v579_v4  ;;  %v265_v16 = vand.u32 127, %v264_v15 }
  0x35   : > { %v223_v6 = vld [vmem:[#allocation2] sm:$0xff]  ;;  %v224_v9 = vld [vmem:[#allocation2 + $0x8] sm:$0xff]  ;;  %v268_v18 = vadd.s32 %v267_v17, %v265_v16 }
  0x36   : > { %221 = vmax.xlane.f32.xlu0 %v218_v3  ;;  %v249_v37 = vld [vmem:[#allocation3] sm:$0xff]  ;;  %v250_v41 = vld [vmem:[#allocation3 + $0x8] sm:$0xff] }
  0x37   : > { %v269_v31 = vld [vmem:[#allocation4] sm:$0xff]  ;;  %v270_v46 = vld [vmem:[#allocation4 + $0x8] sm:$0xff] }
  0x4c   : > { %272 = vperm.xlu0 %480, %v674_v5  }
  0xbb   : > { %v220_v7 = vpop.xlane.xlu0 %219 }
  0xbc   : > { %v225_v8 = vmax.f32 %v223_v6, %v220_v7 }
  0xbe   : > { %v243_v10 = vsub.f32 %v223_v6, %v225_v8  ;;  %262 = vst.msk [vmem:[#allocation2] sm:$0xff] %vm259_vm1, %v225_v8  ;;  %229 = vperm.xlu1 %479, %v225_v8  }
  0xbf   : > { %v222_v11 = vpop.xlane.xlu0 %221 }
  0xc0   : > { %v226_v12 = vmax.f32 %v224_v9, %v222_v11  ;;  %v245_v34 = vmul.f32 1.442695, %v243_v10 }
  0xc2   : > { %v244_v13 = vsub.f32 %v224_v9, %v226_v12  ;;  %263 = vst.msk [vmem:[#allocation2 + $0x8] sm:$0xff] %vm259_vm1, %v226_v12  ;;  %234 = vperm.xlu1 %479, %v226_v12  }
  0xc4   : > { %v247_v35 = vmul.f32 1.442695, %v244_v13 }
  0xc6   : > { %275 = vperm.xlu1 %479, %v682_v14  }
  0xc7   : > { %v273_v19 = vpop.permute.xlu0 %272 }
  0xc8   : > { %vm277_vm2 = vcmp.eq.s32.totalorder %v268_v18, %v273_v19 }
  0xc9   : > { %v279_v20 = vsel %vm277_vm2, %v217_v2, 0.0 }
  0xca   : > { %281 = vadd.xlane.f32.xlu0 %v279_v20 }
 0x139   : > { %v230_v21 = vpop.permute.xlu1 %229 }
 0x13a   : > { %v237_v22 = vsub.f32 %v217_v2, %v230_v21 }
 0x13c   : > { %v239_v23 = vmul.f32 1.442695, %v237_v22 }
 0x13d   : > { %v235_v24 = vpop.permute.xlu1 %234 }
 0x13e   : > { %481 = vpow2.f32 %v239_v23  ;;  %v238_v25 = vsub.f32 %v218_v3, %v235_v24 }
 0x140   : > { %v241_v26 = vmul.f32 1.442695, %v238_v25 }
 0x141   : > { %v276_v28 = vpop.permute.xlu1 %275 }
 0x142   : > { %483 = vpow2.f32 %v241_v26  ;;  %vm278_vm3 = vcmp.eq.s32.totalorder %v268_v18, %v276_v28 }
 0x143   : > { %v280_v30 = vsel %vm278_vm3, %v218_v3, 0.0  ;;  %485 = vpow2.f32 %v245_v34 }
 0x144   : > { %487 = vpow2.f32 %v247_v35 }
 0x14b   : > { %v482_v27 = vpop.eup %481 }
 0x14c   : > { %253 = vadd.xlane.f32.xlu1 %v482_v27 }
 0x14f   : > { %v484_v29 = vpop.eup %483 }
 0x150   : > { %255 = vadd.xlane.f32.xlu1 %v484_v29  ;;  %v486_v36 = vpop.eup %485 }
 0x151   : > { %v251_v38 = vmul.f32 %v486_v36, %v249_v37  ;;  %v488_v39 = vpop.eup %487 }
 0x152   : > { %v252_v43 = vmul.f32 %v488_v39, %v250_v41 }
 0x153   : > { %v282_v32 = vpop.xlane.xlu0 %281 }
 0x154   : > { %283 = vadd.xlane.f32.xlu1 %v280_v30  ;;  %v285_v33 = vadd.f32 %v282_v32, %v269_v31 }
 0x156   : > { %287 = vst.msk [vmem:[#allocation4] sm:$0xff] %vm259_vm1, %v285_v33 }
 0x1d5   : > { %v254_v40 = vpop.xlane.xlu1 %253 }
 0x1d6   : > { %v257_v42 = vadd.f32 %v254_v40, %v251_v38 }
 0x1d8   : > { %260 = vst.msk [vmem:[#allocation3] sm:$0xff] %vm259_vm1, %v257_v42 }
 0x1d9   : > { %v256_v44 = vpop.xlane.xlu1 %255 }
 0x1da   : > { %v258_v45 = vadd.f32 %v256_v44, %v252_v43 }
 0x1dc   : > { %261 = vst.msk [vmem:[#allocation3 + $0x8] sm:$0xff] %vm259_vm1, %v258_v45  ;;  %292 = sbr.rel (%p413_p7) target bundleno = 506 (0x1fa), region = 40 }
 0x1dd   : > { %v284_v47 = vpop.xlane.xlu1 %283 }
 0x1de   : > { %v286_v48 = vadd.f32 %v284_v47, %v270_v46 }
 0x1e0   : > { %288 = vst.msk [vmem:[#allocation4 + $0x8] sm:$0xff] %vm259_vm1, %v286_v48 }
 0x1e1   : > { %v295_v49 = vld [vmem:[#allocation3] sm:$0xff]  ;;  %v293_v52 = vld [vmem:[#allocation2] sm:$0xff]  ;;  %v294_v55 = vld [vmem:[#allocation2 + $0x8] sm:$0xff]  ;;  %vm307_vm4 = vcmp.eq.s32.totalorder %v674_v5, 4294967196  ;;  %vm308_vm5 = vcmp.eq.s32.totalorder %v682_v14, 4294967196 }
 0x1e2   : > { %489 = vlog2.f32 %v295_v49  ;;  %v303_v56 = vld [vmem:[#allocation4] sm:$0xff] }
 0x1e3   : > { %v296_v50 = vld [vmem:[#allocation3 + $0x8] sm:$0xff] }
 0x1e4   : > { %491 = vlog2.f32 %v296_v50 }
 0x1e7   : > { %v304_v59 = vld [vmem:[#allocation4 + $0x8] sm:$0xff] }
 0x1ef   : > { %v490_v51 = vpop.eup %489 }
 0x1f0   : > { %v298_v54 = vmul.f32 0.6931472, %v490_v51 }
 0x1f1   : > { %v492_v53 = vpop.eup %491 }
 0x1f2   : > { %v300_v57 = vmul.f32 0.6931472, %v492_v53  ;;  %v301_v58 = vadd.f32 %v298_v54, %v293_v52 }
 0x1f4   : > { %v302_v60 = vadd.f32 %v300_v57, %v294_v55  ;;  %v305_v61 = vsub.f32 %v301_v58, %v303_v56 }
 0x1f6   : > { %v306_v62 = vsub.f32 %v302_v60, %v304_v59  ;;  %v309_v63 = vsel %vm307_vm4, 0.0, %v305_v61 }
 0x1f7   : > { %311 = vst.msk [vmem:[%s721_s2] sm:$0xff] %vm259_vm1, %v309_v63 }
 0x1f8   : > { %v310_v0 = vsel %vm308_vm5, 0.0, %v306_v62 }
 0x1f9   : > { %312 = vst.msk [vmem:[%s721_s2 + $0x8] sm:$0xff] %vm259_vm1, %v310_v0 }
 0x1fa PF: > { %s15_s14 = sadd.s32 1, %s571_s14   ;;  %s725_s9 = smov %s555_s10 }
 0x1fb   : > { %p12_p9 = scmp.ge.s32.totalorder %s15_s14, 6   ;;  %s726_s10 = smov %s559_s11 }
 0x1fc   : > { %s727_s11 = smov %s644_s21  ;;  %s728_s12 = smov %s567_s13 }
 0x1fd   : > { %s729_s13 = smov %s731_s16  ;;  %14 = sbr.rel (!%p12_p9) target bundleno = 4 (0x4), region = 79 }
 0x202   :  { %335 = vsyncpa [#allocation6], 1 }
 0x203   :  { %337 = vsyncpa [#allocation6 + $0x1], 1 }

</bundles_post_ra>
